<compile_context>
chip_gen: v7x
topology: tpu7x:2x2x1
jax: 0.10.0
libtpu: 0.0.40
codegen_flags: <defaults>
</compile_context>

<pallas_src>
import jax
import jax.numpy as jnp
from jax.experimental import pallas as pl
from jax.experimental.pallas import tpu as pltpu

HIDDEN = 128
OUT_DIM = 5
OUT_PAD = 8  # logits padded to one full sublane group for the MXU tile


def decider_kernel(x_ref, w1_ref, b1_ref, w2_ref, b2_ref, o_ref):
    # Layer 1 (Linear(1,128)): K=1 outer product on the VPU, batch on lanes.
    #   w1_ref: (128, 1), x_ref: (1, tb)  ->  h: (128, tb)
    h = w1_ref[...] * x_ref[...] + b1_ref[...]
    # Sigmoid via a single EUP tanh push: sigmoid(h) = 0.5 * (tanh(h/2) + 1).
    h = 0.5 * (jnp.tanh(0.5 * h) + 1.0)
    # Layer 2 (Linear(128,5), classes padded to 8 rows): bf16 MXU matmul, f32 acc.
    logits = jnp.dot(w2_ref[...], h.astype(jnp.bfloat16),
                     preferred_element_type=jnp.float32)          # (8, tb)
    logits = logits + b2_ref[...]      # padded rows carry bias -1e30 -> exp == 0
    # Numerically stable softmax over the 8-sublane class axis. Exact divide so
    # probabilities sum to 1 to f32 rounding (approx reciprocal broke this before).
    m = jnp.max(logits, axis=0, keepdims=True)
    e = jnp.exp(logits - m)
    denom = jnp.sum(e, axis=0, keepdims=True)
    probs = e / denom
    # Store only the real classes: (OUT_DIM, tb), lane-dense narrow output.
    o_ref[...] = probs[:o_ref.shape[0], :].astype(o_ref.dtype)


def _round_up(x, m):
    return (x + m - 1) // m * m


def decider_forward(x, w1, b1, w2, b2, *, tile_b=8192):
    """x: (B,1); w1: (1,128); b1: (1,128); w2: (128,5); b2: (1,5) -> (B,5)."""
    B = x.shape[0]
    hid = w1.shape[1]
    out_dim = w2.shape[1]

    # Transposed parameters: batch lives on lanes inside the kernel.
    w1t = jnp.asarray(w1, jnp.float32).reshape(hid, 1)            # (128, 1)
    b1t = jnp.asarray(b1, jnp.float32).reshape(hid, 1)            # (128, 1)
    # w2^T padded with zero rows to 8 classes and cast to bf16 for the MXU.
    w2tp = (jnp.zeros((OUT_PAD, hid), jnp.float32)
            .at[:out_dim, :].set(jnp.asarray(w2, jnp.float32).T)
            .astype(jnp.bfloat16))                                 # (8, 128) bf16
    # Padded bias rows are a large negative number so padded classes get prob 0.
    b2p = (jnp.full((OUT_PAD, 1), -1e30, jnp.float32)
           .at[:out_dim, 0].set(jnp.asarray(b2, jnp.float32).reshape(-1)))

    # Batch tile: multiple of 128 lanes; cap near B/2 so the grid keeps >=2 steps
    # and v7x's 2 TensorCores both get work on the "parallel" batch axis.
    tb = min(tile_b, _round_up(B, 128))
    if B >= 2 * 128:
        tb = min(tb, _round_up((B + 1) // 2, 128))
    Bp = _round_up(B, tb)

    # Lane-dense x: (1, Bp); zero-padded batch columns are sliced off at the end.
    xt = jnp.zeros((1, Bp), jnp.float32).at[0, :B].set(
        jnp.asarray(x, jnp.float32).reshape(-1))

    out = pl.pallas_call(
        decider_kernel,
        out_shape=jax.ShapeDtypeStruct((out_dim, Bp), jnp.float32),
        grid_spec=pltpu.PrefetchScalarGridSpec(
            num_scalar_prefetch=0,
            grid=(Bp // tb,),
            in_specs=[
                pl.BlockSpec((1, tb), lambda i: (0, i)),         # x: batch-tiled, lane-dense
                pl.BlockSpec((hid, 1), lambda i: (0, 0)),        # w1^T: resident
                pl.BlockSpec((hid, 1), lambda i: (0, 0)),        # b1^T: resident
                pl.BlockSpec((OUT_PAD, hid), lambda i: (0, 0)),  # w2^T (8,128) bf16: resident
                pl.BlockSpec((OUT_PAD, 1), lambda i: (0, 0)),    # b2 (padded): resident
            ],
            out_specs=pl.BlockSpec((out_dim, tb), lambda i: (0, i)),
        ),
        compiler_params=pltpu.CompilerParams(
            dimension_semantics=("parallel",),   # shard batch tiles across TCs (v7x)
            vmem_limit_bytes=32 * 1024 * 1024,
        ),
    )(xt, w1t, b1t, w2tp, b2p)

    # (OUT_DIM, Bp) -> (B, OUT_DIM): drop batch padding, tiny wrapper transpose.
    return out[:, :B].T


def init_params(key):
    # Deterministic init mimicking PyTorch's default Linear init:
    # U(-1/sqrt(fan_in), 1/sqrt(fan_in)) for both weight and bias.
    k1, k2, k3, k4 = jax.random.split(key, 4)
    in1, hid, out = 1, HIDDEN, OUT_DIM
    bound1 = 1.0 / jnp.sqrt(in1)
    bound2 = 1.0 / jnp.sqrt(hid)
    # stored transposed relative to torch: (in_features, out_features)
    w1 = jax.random.uniform(k1, (in1, hid), jnp.float32, -bound1, bound1)
    b1 = jax.random.uniform(k2, (1, hid), jnp.float32, -bound1, bound1)
    w2 = jax.random.uniform(k3, (hid, out), jnp.float32, -bound2, bound2)
    b2 = jax.random.uniform(k4, (1, out), jnp.float32, -bound2, bound2)
    return w1, b1, w2, b2


if __name__ == "__main__":
    key = jax.random.PRNGKey(0)
    pkey, xkey = jax.random.split(key)
    w1, b1, w2, b2 = init_params(pkey)

    # Small batch of scalar inputs: (B, 1), matching Linear(1, 128)'s input.
    B = 8
    x = jax.random.normal(xkey, (B, 1), jnp.float32)

    out = decider_forward(x, w1, b1, w2, b2)
    out = jax.block_until_ready(out)

    # Reference check in plain JAX (kernel uses bf16 MXU inputs -> loose-ish tol).
    h = jax.nn.sigmoid(x @ w1 + b1)
    logits = h @ w2 + b2
    ref = jax.nn.softmax(logits, axis=-1)
    assert out.shape == (B, OUT_DIM)
    assert jnp.allclose(out, ref, atol=2e-3, rtol=2e-3)
    # Exact-division softmax: rows sum to 1 to f32 rounding.
    assert jnp.allclose(jnp.sum(out, axis=-1), 1.0, atol=1e-3)

    print("KERNEL_OK")
</pallas_src>

<mosaic_0001>
module attributes {stable_mosaic.version = 11 : i64} {
  func.func @decider_kernel(%arg0: i32, %arg1: memref<1x128xf32, #tpu.memory_space<vmem>>, %arg2: memref<128x1xf32, #tpu.memory_space<vmem>>, %arg3: memref<128x1xf32, #tpu.memory_space<vmem>>, %arg4: memref<8x128xbf16, #tpu.memory_space<vmem>>, %arg5: memref<8x1xf32, #tpu.memory_space<vmem>>, %arg6: memref<5x128xf32, #tpu.memory_space<vmem>>) attributes {dimension_semantics = [#tpu.dimension_semantics<parallel>], iteration_bounds = array<i64: 1>, scalar_prefetch = 0 : i64, scratch_operands = 0 : i64, tpu.core_type = #tpu.core_type<tc>, window_params = [{transform_indices = @transform_0, window_bounds = array<i64: 1, 128>}, {pipeline_mode = #tpu.pipeline_mode<synchronous>, transform_indices = @transform_1, window_bounds = array<i64: 128, 1>}, {pipeline_mode = #tpu.pipeline_mode<synchronous>, transform_indices = @transform_2, window_bounds = array<i64: 128, 1>}, {pipeline_mode = #tpu.pipeline_mode<synchronous>, transform_indices = @transform_3, window_bounds = array<i64: 8, 128>}, {pipeline_mode = #tpu.pipeline_mode<synchronous>, transform_indices = @transform_4, window_bounds = array<i64: 8, 1>}, {transform_indices = @transform_5, window_bounds = array<i64: 5, 128>}]} {
    %c0 = arith.constant 0 : index
    %c0_0 = arith.constant 0 : index
    %0 = vector.load %arg2[%c0, %c0_0] : memref<128x1xf32, #tpu.memory_space<vmem>>, vector<128x1xf32>
    %c0_1 = arith.constant 0 : index
    %c0_2 = arith.constant 0 : index
    %1 = vector.load %arg1[%c0_1, %c0_2] : memref<1x128xf32, #tpu.memory_space<vmem>>, vector<1x128xf32>
    %2 = vector.broadcast %0 : vector<128x1xf32> to vector<128x128xf32>
    %3 = vector.broadcast %1 : vector<1x128xf32> to vector<128x128xf32>
    %4 = arith.mulf %2, %3 : vector<128x128xf32>
    %c0_3 = arith.constant 0 : index
    %c0_4 = arith.constant 0 : index
    %5 = vector.load %arg3[%c0_3, %c0_4] : memref<128x1xf32, #tpu.memory_space<vmem>>, vector<128x1xf32>
    %6 = vector.broadcast %5 : vector<128x1xf32> to vector<128x128xf32>
    %7 = arith.addf %4, %6 : vector<128x128xf32>
    %cst = arith.constant 5.000000e-01 : f32
    %8 = vector.broadcast %cst : f32 to vector<128x128xf32>
    %9 = arith.mulf %8, %7 : vector<128x128xf32>
    %10 = math.tanh %9 : vector<128x128xf32>
    %cst_5 = arith.constant 1.000000e+00 : f32
    %11 = vector.broadcast %cst_5 : f32 to vector<128x128xf32>
    %12 = arith.addf %10, %11 : vector<128x128xf32>
    %cst_6 = arith.constant 5.000000e-01 : f32
    %13 = vector.broadcast %cst_6 : f32 to vector<128x128xf32>
    %14 = arith.mulf %13, %12 : vector<128x128xf32>
    %c0_7 = arith.constant 0 : index
    %c0_8 = arith.constant 0 : index
    %15 = vector.load %arg4[%c0_7, %c0_8] : memref<8x128xbf16, #tpu.memory_space<vmem>>, vector<8x128xbf16>
    %16 = arith.truncf %14 : vector<128x128xf32> to vector<128x128xbf16>
    %cst_9 = arith.constant dense<0.000000e+00> : vector<8x128xf32>
    %17 = tpu.matmul %15, %16, %cst_9 {dimension_numbers = #tpu.dot_dimension_numbers<[1], [0], [0], [1], [0, 0, 1, 1], [], []>} : vector<8x128xbf16>, vector<128x128xbf16>, vector<8x128xf32> -> vector<8x128xf32>
    %c0_10 = arith.constant 0 : index
    %c0_11 = arith.constant 0 : index
    %18 = vector.load %arg5[%c0_10, %c0_11] : memref<8x1xf32, #tpu.memory_space<vmem>>, vector<8x1xf32>
    %19 = vector.broadcast %18 : vector<8x1xf32> to vector<8x128xf32>
    %20 = arith.addf %17, %19 : vector<8x128xf32>
    %cst_12 = arith.constant dense<0xFF800000> : vector<128xf32>
    %21 = vector.multi_reduction <maximumf>, %20, %cst_12 [0] : vector<8x128xf32> to vector<128xf32>
    %22 = vector.shape_cast %21 : vector<128xf32> to vector<1x128xf32>
    %23 = vector.broadcast %22 : vector<1x128xf32> to vector<8x128xf32>
    %24 = arith.subf %20, %23 : vector<8x128xf32>
    %25 = math.exp %24 : vector<8x128xf32>
    %cst_13 = arith.constant dense<0.000000e+00> : vector<128xf32>
    %26 = vector.multi_reduction <add>, %25, %cst_13 [0] : vector<8x128xf32> to vector<128xf32>
    %27 = vector.shape_cast %26 : vector<128xf32> to vector<1x128xf32>
    %28 = vector.broadcast %27 : vector<1x128xf32> to vector<8x128xf32>
    %29 = arith.divf %25, %28 : vector<8x128xf32>
    %30 = vector.extract_strided_slice %29 {offsets = [0, 0], sizes = [5, 128], strides = [1, 1]} : vector<8x128xf32> to vector<5x128xf32>
    %c0_14 = arith.constant 0 : index
    %c0_15 = arith.constant 0 : index
    %31 = vector.load %arg6[%c0_14, %c0_15] : memref<5x128xf32, #tpu.memory_space<vmem>>, vector<5x128xf32>
    tpu.vector_store %arg6[%c0_14, %c0_15], %30 {strides = array<i32>} : memref<5x128xf32, #tpu.memory_space<vmem>>, vector<5x128xf32>,
    return
  }
  func.func @transform_0(%arg0: i32) -> (i32, i32) {
    %c0_i32 = arith.constant 0 : i32
    %c0_i32_0 = arith.constant 0 : i32
    return %c0_i32, %arg0 : i32, i32
  }
  func.func @transform_1(%arg0: i32) -> (i32, i32) {
    %c0_i32 = arith.constant 0 : i32
    %c0_i32_0 = arith.constant 0 : i32
    %c0_i32_1 = arith.constant 0 : i32
    return %c0_i32, %c0_i32_0 : i32, i32
  }
  func.func @transform_2(%arg0: i32) -> (i32, i32) {
    %c0_i32 = arith.constant 0 : i32
    %c0_i32_0 = arith.constant 0 : i32
    %c0_i32_1 = arith.constant 0 : i32
    return %c0_i32, %c0_i32_0 : i32, i32
  }
  func.func @transform_3(%arg0: i32) -> (i32, i32) {
    %c0_i32 = arith.constant 0 : i32
    %c0_i32_0 = arith.constant 0 : i32
    %c0_i32_1 = arith.constant 0 : i32
    return %c0_i32, %c0_i32_0 : i32, i32
  }
  func.func @transform_4(%arg0: i32) -> (i32, i32) {
    %c0_i32 = arith.constant 0 : i32
    %c0_i32_0 = arith.constant 0 : i32
    %c0_i32_1 = arith.constant 0 : i32
    return %c0_i32, %c0_i32_0 : i32, i32
  }
  func.func @transform_5(%arg0: i32) -> (i32, i32) {
    %c0_i32 = arith.constant 0 : i32
    %c0_i32_0 = arith.constant 0 : i32
    return %c0_i32, %arg0 : i32, i32
  }
}

</mosaic_0001>

<bundles_post_ra>
// kernel: tpu_custom_call.1
= control target key start
LH: loop header
LB: loop body
LE: loop exit
PB: predicated region body
PF: predicated region fallthrough
CT: control target
= control target key end

     0   :  { %v500_v2 = vmov 0   ;;  %s678_s0 = inlined_call_operand.vmem [shape: f32[1,128], index: 0, kind: input, shape index: {}]   ;;  %s679_s1 = inlined_call_operand.vmem [shape: f32[128,1], index: 1, kind: input, shape index: {}]   ;;  %s680_s2 = inlined_call_operand.vmem [shape: f32[128,1], index: 2, kind: input, shape index: {}]   ;;  %s681_s3 = inlined_call_operand.vmem [shape: bf16[8,128], index: 3, kind: input, shape index: {}]   ;;  %s682_s4 = inlined_call_operand.vmem [shape: f32[8,1], index: 4, kind: input, shape index: {}]   ;;  %s683_s5 = inlined_call_operand.hbm [shape: f32[5,128], index: 5, kind: output, shape index: {}]  }
   0x1   :  { %v141_v0 = vld [vmem:[%s680_s2] sm:$0xff]  ;;  %439 = vset.pattern.permute.xlu1 %v500_v2  ;;  %438 = vset.pattern.permute.xlu0 %v500_v2  ;;  %v142_v3 = vld [vmem:[%s680_s2 + $0x8] sm:$0xff]  ;;  %v25_v5 = vld [vmem:[%s679_s1 + $0x18] sm:$0xff] }
   0x2   :  { %v22_v1 = vld [vmem:[%s679_s1] sm:$0xff]  ;;  %159 = vperm.xlu1 %439, %v141_v0   ;;  %v23_v4 = vld [vmem:[%s679_s1 + $0x8] sm:$0xff]  ;;  %v24_v6 = vld [vmem:[%s679_s1 + $0x10] sm:$0xff] }
   0x3   :  { %41 = vperm.xlu0 %438, %v22_v1   ;;  %v144_v7 = vld [vmem:[%s680_s2 + $0x18] sm:$0xff]  ;;  %v143_v8 = vld [vmem:[%s680_s2 + $0x10] sm:$0xff] }
   0x6   :  { %164 = vperm.xlu1 %439, %v142_v3  }
   0x7   :  { %46 = vperm.xlu0 %438, %v23_v4  }
   0xa   :  { %56 = vperm.xlu1 %439, %v25_v5  }
   0xb   :  { %51 = vperm.xlu0 %438, %v24_v6  }
   0xc   :  { %10 = vsyncpa [#allocation3], 0  ;;  %v27_v9 = vld [vmem:[%s679_s1 + $0x28] sm:$0xff]  ;;  %v26_v10 = vld [vmem:[%s679_s1 + $0x20] sm:$0xff]  ;;  %v501_v17 = vmov 0.0   ;;  %vm502_vm0 = vmmov 0  }
   0xd   :  { %v146_v11 = vld [vmem:[%s680_s2 + $0x28] sm:$0xff]  ;;  %v145_v12 = vld [vmem:[%s680_s2 + $0x20] sm:$0xff]  ;;  %v29_v13 = vld [vmem:[%s679_s1 + $0x38] sm:$0xff]  ;;  %414 = vmatprep.subr.bf16.mxu0 %v501_v17  ;;  %430 = vmatprep.mubr.msk.bf16.mxu0 %vm502_vm0, %v501_v17 }
   0xe   :  { %174 = vperm.xlu1 %439, %v144_v7   ;;  %v28_v14 = vld [vmem:[%s679_s1 + $0x30] sm:$0xff]  ;;  %v148_v15 = vld [vmem:[%s680_s2 + $0x38] sm:$0xff]  ;;  %v31_v18 = vld [vmem:[%s679_s1 + $0x48] sm:$0xff] }
   0xf   :  { %169 = vperm.xlu0 %438, %v143_v8   ;;  %v147_v16 = vld [vmem:[%s680_s2 + $0x30] sm:$0xff]  ;;  %v30_v19 = vld [vmem:[%s679_s1 + $0x40] sm:$0xff]  ;;  %v150_v20 = vld [vmem:[%s680_s2 + $0x48] sm:$0xff] }
  0x10   :  { %v149_v21 = vld [vmem:[%s680_s2 + $0x40] sm:$0xff]  ;;  %v33_v22 = vld [vmem:[%s679_s1 + $0x58] sm:$0xff]  ;;  %v32_v23 = vld [vmem:[%s679_s1 + $0x50] sm:$0xff] }
  0x11   :  { %v152_v24 = vld [vmem:[%s680_s2 + $0x58] sm:$0xff]  ;;  %v151_v25 = vld [vmem:[%s680_s2 + $0x50] sm:$0xff]  ;;  %v35_v26 = vld [vmem:[%s679_s1 + $0x68] sm:$0xff] }
  0x12   :  { %66 = vperm.xlu1 %439, %v27_v9   ;;  %v34_v27 = vld [vmem:[%s679_s1 + $0x60] sm:$0xff]  ;;  %v154_v28 = vld [vmem:[%s680_s2 + $0x68] sm:$0xff]  ;;  %v37_v30 = vld [vmem:[%s679_s1 + $0x78] sm:$0xff] }
  0x13   :  { %61 = vperm.xlu0 %438, %v26_v10   ;;  %v153_v29 = vld [vmem:[%s680_s2 + $0x60] sm:$0xff]  ;;  %v36_v31 = vld [vmem:[%s679_s1 + $0x70] sm:$0xff]  ;;  %v156_v32 = vld [vmem:[%s680_s2 + $0x78] sm:$0xff] }
  0x14   :  { %v155_v33 = vld [vmem:[%s680_s2 + $0x70] sm:$0xff]  ;;  %v326_v34 = vld [vmem:[%s682_s4] sm:$0xff] }
  0x15   :  { %v638_v35 = vld [vmem:[%s678_s0] ss:$0 sm:$0xff] }
  0x16   :  { %184 = vperm.xlu1 %439, %v146_v11  }
  0x17   :  { %179 = vperm.xlu0 %438, %v145_v12  }
  0x1a   :  { %76 = vperm.xlu1 %439, %v29_v13  }
  0x1b   :  { %71 = vperm.xlu0 %438, %v28_v14  }
  0x1e   :  { %194 = vperm.xlu1 %439, %v148_v15  }
  0x1f   :  { %189 = vperm.xlu0 %438, %v147_v16  }
  0x22   :  { %86 = vperm.xlu1 %439, %v31_v18  }
  0x23   :  { %81 = vperm.xlu0 %438, %v30_v19  }
  0x26   :  { %204 = vperm.xlu1 %439, %v150_v20  }
  0x27   :  { %199 = vperm.xlu0 %438, %v149_v21  }
  0x2a   :  { %96 = vperm.xlu1 %439, %v33_v22  }
  0x2b   :  { %91 = vperm.xlu0 %438, %v32_v23  }
  0x2e   :  { %214 = vperm.xlu1 %439, %v152_v24  }
  0x2f   :  { %209 = vperm.xlu0 %438, %v151_v25  }
  0x32   :  { %106 = vperm.xlu1 %439, %v35_v26  }
  0x33   :  { %101 = vperm.xlu0 %438, %v34_v27  }
  0x36   :  { %224 = vperm.xlu1 %439, %v154_v28  }
  0x37   :  { %219 = vperm.xlu0 %438, %v153_v29  }
  0x3a   :  { %116 = vperm.xlu1 %439, %v37_v30  }
  0x3b   :  { %111 = vperm.xlu0 %438, %v36_v31  }
  0x3e   :  { %234 = vperm.xlu1 %439, %v156_v32  }
  0x3f   :  { %229 = vperm.xlu0 %438, %v155_v33  }
  0x43   :  { %329 = vperm.xlu0 %438, %v326_v34  }
  0x81   :  { %v160_v36 = vpop.permute.xlu1 %159 }
  0x82   :  { %v42_v37 = vpop.permute.xlu0 %41 }
  0x83   :  { %v125_v38 = vmul.f32 %v638_v35, %v42_v37 }
  0x85   :  { %v237_v39 = vadd.f32 %v160_v36, %v125_v38  ;;  %v165_v40 = vpop.permute.xlu1 %164 }
  0x86   :  { %v47_v41 = vpop.permute.xlu0 %46 }
  0x87   :  { %v253_v42 = vmul.f32 0.5, %v237_v39  ;;  %v126_v43 = vmul.f32 %v638_v35, %v47_v41 }
  0x89   :  { %440 = vtanh.f32 %v253_v42  ;;  %v238_v44 = vadd.f32 %v165_v40, %v126_v43  ;;  %v57_v45 = vpop.permute.xlu1 %56 }
  0x8a   :  { %v52_v46 = vpop.permute.xlu0 %51  ;;  %v128_v48 = vmul.f32 %v638_v35, %v57_v45 }
  0x8b   :  { %v254_v47 = vmul.f32 0.5, %v238_v44  ;;  %v127_v49 = vmul.f32 %v638_v35, %v52_v46 }
  0x8d   :  { %442 = vtanh.f32 %v254_v47  ;;  %v175_v50 = vpop.permute.xlu1 %174 }
  0x8e   :  { %v170_v51 = vpop.permute.xlu0 %169  ;;  %v240_v52 = vadd.f32 %v175_v50, %v128_v48 }
  0x8f   :  { %v239_v53 = vadd.f32 %v170_v51, %v127_v49 }
  0x90   :  { %v256_v54 = vmul.f32 0.5, %v240_v52 }
  0x91   :  { %v255_v55 = vmul.f32 0.5, %v239_v53  ;;  %v67_v56 = vpop.permute.xlu1 %66 }
  0x92   :  { %v62_v57 = vpop.permute.xlu0 %61  ;;  %444 = vtanh.f32 %v256_v54  ;;  %v130_v59 = vmul.f32 %v638_v35, %v67_v56 }
  0x93   :  { %v441_v58 = vpop.eup %440  ;;  %446 = vtanh.f32 %v255_v55  ;;  %v129_v60 = vmul.f32 %v638_v35, %v62_v57 }
  0x94   :  { %v285_v63 = vadd.f32 1.0, %v441_v58 }
  0x95   :  { %v185_v61 = vpop.permute.xlu1 %184 }
  0x96   :  { %v180_v62 = vpop.permute.xlu0 %179  ;;  %v242_v1 = vadd.f32 %v185_v61, %v130_v59  ;;  %v301_v8 = vmul.f32 0.5, %v285_v63 }
  0x97   :  { %v443_v0 = vpop.eup %442  ;;  %v241_v2 = vadd.f32 %v180_v62, %v129_v60 }
  0x98   :  { %v286_v3 = vadd.f32 1.0, %v443_v0  ;;  %v258_v4 = vmul.f32 0.5, %v242_v1 }
  0x99   :  { %v257_v5 = vmul.f32 0.5, %v241_v2  ;;  %v77_v6 = vpop.permute.xlu1 %76 }
  0x9a   :  { %v72_v7 = vpop.permute.xlu0 %71  ;;  %v302_v9 = vmul.f32 0.5, %v286_v3  ;;  %448 = vtanh.f32 %v258_v4  ;;  %v132_v12 = vmul.f32 %v638_v35, %v77_v6 }
  0x9b   :  { %450 = vtanh.f32 %v257_v5  ;;  %v131_v13 = vmul.f32 %v638_v35, %v72_v7 }
  0x9c   :  { %v318_v10 = vpack.c.bf16 %v302_v9, %v301_v8  ;;  %v445_v11 = vpop.eup %444 }
  0x9d   :  { %v447_v14 = vpop.eup %446  ;;  %v288_v15 = vadd.f32 1.0, %v445_v11  ;;  %v195_v16 = vpop.permute.xlu1 %194 }
  0x9e   :  { %415 = vmatpush3.bf16.msra.mxu0 %v318_v10  ;;  %v190_v18 = vpop.permute.xlu0 %189  ;;  %v287_v19 = vadd.f32 1.0, %v447_v14  ;;  %v244_v20 = vadd.f32 %v195_v16, %v132_v12 }
  0x9f   :  { %v243_v21 = vadd.f32 %v190_v18, %v131_v13  ;;  %416 = vmatprep.subr.bf16.mxu0 %v501_v17  ;;  %v304_v22 = vmul.f32 0.5, %v288_v15 }
  0xa0   :  { %v303_v23 = vmul.f32 0.5, %v287_v19  ;;  %v260_v24 = vmul.f32 0.5, %v244_v20 }
  0xa1   :  { %v259_v25 = vmul.f32 0.5, %v243_v21  ;;  %v87_v26 = vpop.permute.xlu1 %86 }
  0xa2   :  { %v82_v27 = vpop.permute.xlu0 %81  ;;  %452 = vtanh.f32 %v260_v24  ;;  %v319_v28 = vpack.c.bf16 %v304_v22, %v303_v23  ;;  %v134_v30 = vmul.f32 %v638_v35, %v87_v26 }
  0xa3   :  { %454 = vtanh.f32 %v259_v25  ;;  %v133_v31 = vmul.f32 %v638_v35, %v82_v27 }
  0xa4   :  { %v449_v29 = vpop.eup %448  ;;  %417 = vmatpush3.bf16.msra.mxu0 %v319_v28 }
  0xa5   :  { %v451_v32 = vpop.eup %450  ;;  %v290_v33 = vadd.f32 1.0, %v449_v29  ;;  %v205_v34 = vpop.permute.xlu1 %204  ;;  %418 = vmatprep.subr.bf16.mxu0 %v501_v17 }
  0xa6   :  { %v200_v36 = vpop.permute.xlu0 %199  ;;  %v289_v37 = vadd.f32 1.0, %v451_v32  ;;  %v246_v38 = vadd.f32 %v205_v34, %v134_v30 }
  0xa7   :  { %v245_v39 = vadd.f32 %v200_v36, %v133_v31  ;;  %v306_v40 = vmul.f32 0.5, %v290_v33 }
  0xa8   :  { %v305_v41 = vmul.f32 0.5, %v289_v37  ;;  %v262_v42 = vmul.f32 0.5, %v246_v38 }
  0xa9   :  { %v261_v43 = vmul.f32 0.5, %v245_v39  ;;  %v97_v44 = vpop.permute.xlu1 %96 }
  0xaa   :  { %v92_v45 = vpop.permute.xlu0 %91  ;;  %456 = vtanh.f32 %v262_v42  ;;  %v320_v46 = vpack.c.bf16 %v306_v40, %v305_v41  ;;  %v136_v48 = vmul.f32 %v638_v35, %v97_v44 }
  0xab   :  { %458 = vtanh.f32 %v261_v43  ;;  %v135_v49 = vmul.f32 %v638_v35, %v92_v45 }
  0xac   :  { %v453_v47 = vpop.eup %452  ;;  %419 = vmatpush3.bf16.msra.mxu0 %v320_v46 }
  0xad   :  { %v455_v50 = vpop.eup %454  ;;  %v292_v51 = vadd.f32 1.0, %v453_v47  ;;  %v215_v52 = vpop.permute.xlu1 %214  ;;  %420 = vmatprep.subr.bf16.mxu0 %v501_v17  ;;  %v317_v47 = vld [vmem:[%s681_s3] sm:$0xf]  ;;  %s503_s3 = smov [#allocation2]  }
  0xae   :  { %v210_v53 = vpop.permute.xlu0 %209  ;;  %v291_v54 = vadd.f32 1.0, %v455_v50  ;;  %v248_v55 = vadd.f32 %v215_v52, %v136_v48  ;;  %s396_s4 = sshll.u32 %s503_s3, 4  ;;  %s397_s4 = int_to_ptr.vmem [resolvable:$true] %s396_s4 }
  0xaf   :  { %v247_v56 = vadd.f32 %v210_v53, %v135_v49  ;;  %v308_v57 = vmul.f32 0.5, %v292_v51  ;;  %s476_s10 = scalar_lea.vmem %s397_s4, 128  ;;  %p481_p1 = scmp.lt.s32.totalorder %s397_s4, %s397_s4 }
  0xb0   :  { %v307_v58 = vmul.f32 0.5, %v291_v54  ;;  %v264_v59 = vmul.f32 0.5, %v248_v55  ;;  %p477_p0 = scmp.ne.s32.totalorder %s397_s4, %s476_s10  ;;  %p482_p2 = scmp.lt.s32.totalorder %s476_s10, %s476_s10 }
  0xb1   :  { %v263_v60 = vmul.f32 0.5, %v247_v56  ;;  %v107_v61 = vpop.permute.xlu1 %106 }
  0xb2   :  { %v102_v62 = vpop.permute.xlu0 %101  ;;  %460 = vtanh.f32 %v264_v59  ;;  %v321_v63 = vpack.c.bf16 %v308_v57, %v307_v58  ;;  %v138_v1 = vmul.f32 %v638_v35, %v107_v61  ;;  %p483_p3 = por %p482_p2, %p481_p1 }
  0xb3   :  { %462 = vtanh.f32 %v263_v60  ;;  %v137_v2 = vmul.f32 %v638_v35, %v102_v62 }
  0xb4   :  { %v457_v0 = vpop.eup %456  ;;  %421 = vmatpush3.bf16.msra.mxu0 %v321_v63  ;;  %p484_p4 = pnand %p483_p3, %p477_p0 }
  0xb5   :  { %v459_v3 = vpop.eup %458  ;;  %v294_v4 = vadd.f32 1.0, %v457_v0  ;;  %v225_v5 = vpop.permute.xlu1 %224  ;;  %422 = vmatprep.subr.bf16.mxu0 %v501_v17 }
  0xb6   :  { %v220_v6 = vpop.permute.xlu0 %219  ;;  %v293_v7 = vadd.f32 1.0, %v459_v3  ;;  %v250_v8 = vadd.f32 %v225_v5, %v138_v1 }
  0xb7   :  { %v249_v9 = vadd.f32 %v220_v6, %v137_v2  ;;  %v310_v10 = vmul.f32 0.5, %v294_v4 }
  0xb8   :  { %v309_v11 = vmul.f32 0.5, %v293_v7  ;;  %v266_v12 = vmul.f32 0.5, %v250_v8 }
  0xb9   :  { %v265_v13 = vmul.f32 0.5, %v249_v9  ;;  %v117_v14 = vpop.permute.xlu1 %116 }
  0xba   :  { %v112_v15 = vpop.permute.xlu0 %111  ;;  %464 = vtanh.f32 %v266_v12  ;;  %v322_v16 = vpack.c.bf16 %v310_v10, %v309_v11  ;;  %v140_v19 = vmul.f32 %v638_v35, %v117_v14 }
  0xbb   :  { %466 = vtanh.f32 %v265_v13  ;;  %v139_v20 = vmul.f32 %v638_v35, %v112_v15 }
  0xbc   :  { %v461_v18 = vpop.eup %460  ;;  %423 = vmatpush3.bf16.msra.mxu0 %v322_v16 }
  0xbd   :  { %v463_v21 = vpop.eup %462  ;;  %v296_v22 = vadd.f32 1.0, %v461_v18  ;;  %v235_v23 = vpop.permute.xlu1 %234  ;;  %424 = vmatprep.subr.bf16.mxu0 %v501_v17 }
  0xbe   :  { %v230_v24 = vpop.permute.xlu0 %229  ;;  %v295_v25 = vadd.f32 1.0, %v463_v21  ;;  %v252_v26 = vadd.f32 %v235_v23, %v140_v19 }
  0xbf   :  { %v251_v27 = vadd.f32 %v230_v24, %v139_v20  ;;  %v312_v28 = vmul.f32 0.5, %v296_v22 }
  0xc0   :  { %v311_v29 = vmul.f32 0.5, %v295_v25  ;;  %v268_v30 = vmul.f32 0.5, %v252_v26 }
  0xc1   :  { %v267_v31 = vmul.f32 0.5, %v251_v27 }
  0xc2   :  { %468 = vtanh.f32 %v268_v30  ;;  %v323_v32 = vpack.c.bf16 %v312_v28, %v311_v29  ;;  %v330_v48 = vpop.permute.xlu0 %329 }
  0xc3   :  { %470 = vtanh.f32 %v267_v31 }
  0xc4   :  { %v465_v33 = vpop.eup %464  ;;  %425 = vmatpush3.bf16.msra.mxu0 %v323_v32 }
  0xc5   :  { %v467_v35 = vpop.eup %466  ;;  %v298_v34 = vadd.f32 1.0, %v465_v33  ;;  %426 = vmatprep.subr.bf16.mxu0 %v501_v17 }
  0xc6   :  { %v297_v36 = vadd.f32 1.0, %v467_v35 }
  0xc7   :  { %v314_v37 = vmul.f32 0.5, %v298_v34 }
  0xc8   :  { %v313_v38 = vmul.f32 0.5, %v297_v36 }
  0xca   :  { %v324_v39 = vpack.c.bf16 %v314_v37, %v313_v38 }
  0xcc   :  { %v469_v40 = vpop.eup %468  ;;  %427 = vmatpush3.bf16.msra.mxu0 %v324_v39 }
  0xcd   :  { %v471_v41 = vpop.eup %470  ;;  %v300_v42 = vadd.f32 1.0, %v469_v40  ;;  %428 = vmatprep.subr.bf16.mxu0 %v501_v17 }
  0xce   :  { %v299_v43 = vadd.f32 1.0, %v471_v41 }
  0xcf   :  { %v316_v44 = vmul.f32 0.5, %v300_v42 }
  0xd0   :  { %v315_v45 = vmul.f32 0.5, %v299_v43 }
  0xd2   :  { %v325_v46 = vpack.c.bf16 %v316_v44, %v315_v45 }
  0xd4   :  { %429 = vmatpush3.bf16.msra.mxu0 %v325_v46 }
  0xd7   :  { %431 = vmatmul.mubr.bf16.vlgmr.msra.gmra.mrb[0].mxu0 %v317_v47 }
 0x1aa   :  { %v366_v49 = vpop.f32.mrb[0].mxu0 }
 0x1ab   :  { %v367_v50 = vadd.f32 %v366_v49, %v330_v48  ;;  %v432_v51 = vpop.f32.mrb[1].mxu0 }
 0x1ac   :  { %v369_v52 = vpop.f32.mrb[2].mxu0 }
 0x1ad   :  { %v372_v53 = vrot.slane %v367_v50, 4  ;;  %v433_v54 = vpop.f32.mrb[3].mxu0 }
 0x1af   :  { %v373_v55 = vmax.f32 %v367_v50, %v372_v53 }
 0x1b1   :  { %v374_v56 = vrot.slane %v373_v55, 2 }
 0x1b3   :  { %v375_v17 = vmax.f32 %v373_v55, %v374_v56 }
 0x1b5   :  { %v376_v57 = vrot.slane %v375_v17, 1 }
 0x1b7   :  { %v377_v58 = vmax.f32 %v375_v17, %v376_v57 }
 0x1b9   :  { %v378_v59 = vsub.f32 %v367_v50, %v377_v58 }
 0x1bb   :  { %v379_v60 = vmul.f32 1.442695, %v378_v59 }
 0x1bd   :  { %472 = vpow2.f32 %v379_v60 }
 0x1c7   :  { %v473_v61 = vpop.eup %472 }
 0x1c8   :  { %v381_v62 = vrot.slane %v473_v61, 4 }
 0x1ca   :  { %v382_v63 = vadd.f32 %v473_v61, %v381_v62 }
 0x1cc   :  { %v383_v0 = vrot.slane %v382_v63, 2 }
 0x1ce   :  { %v384_v1 = vadd.f32 %v383_v0, %v382_v63 }
 0x1d0   :  { %v385_v2 = vrot.slane %v384_v1, 1 }
 0x1d2   :  { %v386_v3 = vadd.f32 %v385_v2, %v384_v1 }
 0x1d4   :  { %474 = vrcp.f32 %v386_v3 }
 0x1de   :  { %v475_v4 = vpop.eup %474 }
 0x1df   :  { %v388_v5 = vmul.f32 %v475_v4, %v473_v61 }
 0x1e1   :  { %389 = vst [vmem:[#allocation2] sm:$0x1f] %v388_v5 }
 0x1e2   :  { %487 = shalt.err (!%p484_p4)
}
 0x1e3   :  { %s488_s13 = scalar_lea.hbm %s683_s5, 128 }
 0x1e4   :  { %p489_p5 = scmp.ne.s32.totalorder %s683_s5, %s488_s13  ;;  %p492_p6 = scmp.lt.u32.totalorder %s488_s13, %s683_s5 }
 0x1e6   :  { %p494_p7 = pnand %p492_p6, %p489_p5 }
 0x1e8   :  { %497 = shalt.err (!%p494_p7)
}
 0x1e9   :  { %399 = dma.vmem_to_hbm [thread:$0]  %s397_s4, 128, %s683_s5, [#allocation3]  }
 0x1ea   :  { %498 = dma.done.wait [#allocation3], 128  }
 0x1eb   :  { %499 = vsyncadd [#allocation3], 4294967168 }
 0x1ec   :  { %403 = vsyncpa [#allocation3], 1 }

</bundles_post_ra>
